<compile_context>
chip_gen: v7x
topology: tpu7x:2x2x1
jax: 0.10.0
libtpu: 0.0.40
codegen_flags: <defaults>
</compile_context>

<pallas_src>
import functools

import jax
import jax.numpy as jnp
from jax import lax
from jax.experimental import pallas as pl
from jax.experimental.pallas import tpu as pltpu


# ---------------------------------------------------------------------------
# GELU variants (computed in f32 inside the kernel epilogue)
# ---------------------------------------------------------------------------
def _gelu_exact(x):
    # exact GELU: 0.5 * x * (1 + erf(x / sqrt(2)))  (erf = VPU polynomial)
    return 0.5 * x * (1.0 + lax.erf(x * 0.7071067811865476))


def _gelu_tanh(x):
    # tanh approximation (approximate="tanh") -- goes through the EUP slot
    c = 0.7978845608028654  # sqrt(2/pi)
    return 0.5 * x * (1.0 + jnp.tanh(c * (x + 0.044715 * x * x * x)))


# ---------------------------------------------------------------------------
# Kernel
# ---------------------------------------------------------------------------
def _gelu_proj_kernel(x_ref, w_ref, b_ref, o_ref, *scratch,
                      approximate, use_scratch):
    # grid = (M tiles, N tiles, K tiles); reduction axis (k) is last and
    # "arbitrary".  The output block's index_map ignores k, so o_ref is
    # resident across the whole k loop -> f32 outputs accumulate into it
    # directly; other output dtypes use an f32 VMEM scratch accumulator.
    acc = scratch[0] if use_scratch else o_ref
    k = pl.program_id(2)

    @pl.when(k == 0)
    def _():
        acc[...] = jnp.zeros_like(acc)

    acc[...] += jnp.dot(
        x_ref[...], w_ref[...], preferred_element_type=jnp.float32
    )

    @pl.when(k == pl.num_programs(2) - 1)
    def _():
        z = acc[...] + b_ref[...]          # bias already f32 (wrapper cast)
        if approximate == "tanh":
            y = _gelu_tanh(z)
        else:
            y = _gelu_exact(z)
        o_ref[...] = y.astype(o_ref.dtype)


# ---------------------------------------------------------------------------
# Tiling / VMEM helpers
# ---------------------------------------------------------------------------
def _cdiv(a, b):
    return -(-a // b)


def _round_up(a, b):
    return _cdiv(a, b) * b


def _sublane(dtype):
    # sublane packing multiple for the second-to-last block dim
    return max(8, 32 // jnp.dtype(dtype).itemsize)


def _vmem_capacity_bytes():
    # Generation-aware physical VMEM (128 MiB on v5e/v6e, 64 MiB/TC on v7x).
    try:
        info = pltpu.get_tpu_info()
        cap = getattr(info, "vmem_capacity_bytes", None)
        if cap:
            return int(cap)
    except Exception:
        pass
    return 64 << 20  # conservative fallback (v7x per-core size)


def _pick_tile(dim, align, cap):
    # One full-dim block when it fits the cap (block dim == array dim is
    # always a legal block shape); otherwise balanced, aligned tiles <= cap
    # (block <= array dim, so only the trailing block is a masked partial).
    if dim <= cap:
        return dim
    nb = _cdiv(dim, cap)
    return min(cap, _round_up(_cdiv(dim, nb), align))


def _pick_tk(K, cap):
    # K must be fully covered by real data (garbage in the reduction dim would
    # contaminate valid outputs), so prefer tiles that avoid padding entirely.
    if K <= cap:
        return K                      # single full-dim k block, no padding
    cap = (cap // 128) * 128
    t = cap
    while t >= 128:                   # a 128-multiple that divides K exactly
        if K % t == 0:
            return t
        t -= 128
    nb = _cdiv(K, cap)                # otherwise balance blocks; K gets padded
    return min(cap, _round_up(_cdiv(K, nb), 128))


def _working_set_bytes(tm, tn, tk, x_bpe, w_bpe, out_bpe, use_scratch):
    est = 2 * (tm * tk * x_bpe + tk * tn * w_bpe + tn * 4)   # double-buffered
    est += 2 * tm * tn * out_bpe
    if use_scratch:
        est += tm * tn * 4
    return est


# ---------------------------------------------------------------------------
# Wrapper
# ---------------------------------------------------------------------------
def gelu_linear(x, w, b=None, *, approximate="none", tm=None, tn=None, tk=None):
    """Fused Linear + GELU.

    x: (..., dim_in)   w: (dim_in, dim_out)  (i.e. PyTorch weight.T)
    b: (dim_out,) or None
    Returns (..., dim_out), dtype = x.dtype.
    """
    orig_shape = x.shape
    K = orig_shape[-1]
    N = w.shape[1]
    x2 = x.reshape(-1, K)
    M = x2.shape[0]
    out_dtype = x.dtype

    # ---- dtype-match the MXU operands -------------------------------------
    # bf16/f16 activations get same-dtype weights (halves weight DMA traffic
    # and uses the fast MXU path); accumulation stays f32 in the kernel.
    if jnp.dtype(x2.dtype).itemsize == 2 and w.dtype != x2.dtype:
        w = w.astype(x2.dtype)

    if b is None:
        b = jnp.zeros((N,), jnp.float32)
    b2 = b.astype(jnp.float32).reshape(1, N)

    x_bpe = jnp.dtype(x2.dtype).itemsize
    w_bpe = jnp.dtype(w.dtype).itemsize
    out_bpe = jnp.dtype(out_dtype).itemsize
    use_scratch = jnp.dtype(out_dtype) != jnp.dtype(jnp.float32)

    # ---- generation-aware tile caps & VMEM budget --------------------------
    cap = _vmem_capacity_bytes()
    budget = int(cap * 0.7)            # double-buffered working-set budget
    tm_cap = tn_cap = 1024
    if budget >= (80 << 20) and x_bpe <= 2:      # v5e/v6e 128 MiB, bf16 path
        tm_cap = tn_cap = 2048
    tk_cap = 1024 if x_bpe <= 2 else 512

    m_align = max(_sublane(x2.dtype), _sublane(out_dtype))
    auto_mn = (tm is None) and (tn is None)

    if tm is None:
        tm = _pick_tile(M, m_align, tm_cap)
    else:
        tm = min(_round_up(tm, m_align), M) if M >= m_align else M
    if tn is None:
        tn = _pick_tile(N, 128, tn_cap)
    else:
        tn = min(_round_up(tn, 128), N) if N >= 128 else N
    if tk is None:
        tk = _pick_tk(K, tk_cap)
    else:
        tk = min(_round_up(tk, 128), K) if K >= 128 else K

    # ---- v7x: both TensorCores shard the "parallel" axes -> need >=2 tiles --
    if auto_mn and _cdiv(M, tm) * _cdiv(N, tn) < 2:
        if N > 128:
            tn = _round_up(_cdiv(N, 2), 128)
        elif M > m_align:
            tm = _round_up(_cdiv(M, 2), m_align)

    # ---- shrink-to-fit safety net (rarely triggers with auto tiles) --------
    while (_working_set_bytes(tm, tn, tk, x_bpe, w_bpe, out_bpe, use_scratch)
           > budget):
        if tk >= max(tm, tn) and tk > 128:
            tk = max(128, _round_up(tk // 2, 128))
        elif tn >= tm and tn > 128:
            tn = max(128, _round_up(tn // 2, 128))
        elif tm > m_align:
            tm = max(m_align, _round_up(tm // 2, m_align))
        else:
            break

    # ---- K padding only (M/N edge tiles are handled by masked partial blocks)
    Kp = _round_up(K, tk)
    if Kp != K:
        x2 = jnp.pad(x2, ((0, 0), (0, Kp - K)))
        w = jnp.pad(w, ((0, Kp - K), (0, 0)))

    grid = (_cdiv(M, tm), _cdiv(N, tn), Kp // tk)

    est = _working_set_bytes(tm, tn, tk, x_bpe, w_bpe, out_bpe, use_scratch)
    vmem_limit = int(min(int(cap * 0.9), max(32 << 20, est + (8 << 20))))

    scratch_shapes = [pltpu.VMEM((tm, tn), jnp.float32)] if use_scratch else []
    kernel = functools.partial(
        _gelu_proj_kernel, approximate=approximate, use_scratch=use_scratch
    )

    out = pl.pallas_call(
        kernel,
        out_shape=jax.ShapeDtypeStruct((M, N), out_dtype),
        grid_spec=pltpu.PrefetchScalarGridSpec(
            num_scalar_prefetch=0,
            grid=grid,
            in_specs=[
                pl.BlockSpec((tm, tk), lambda i, j, k: (i, k)),
                pl.BlockSpec((tk, tn), lambda i, j, k: (k, j)),
                pl.BlockSpec((1, tn), lambda i, j, k: (0, j)),
            ],
            out_specs=pl.BlockSpec((tm, tn), lambda i, j, k: (i, j)),
            scratch_shapes=scratch_shapes,
        ),
        compiler_params=pltpu.CompilerParams(
            dimension_semantics=("parallel", "parallel", "arbitrary"),
            vmem_limit_bytes=vmem_limit,
        ),
    )(x2, w, b2)

    return out.reshape(*orig_shape[:-1], N)


class GELUPallas:
    """Pallas equivalent of diffusers GELU(dim_in, dim_out, approximate, bias)."""

    def __init__(self, dim_in, dim_out, approximate="none", bias=True, key=None):
        key = key if key is not None else jax.random.PRNGKey(0)
        kw, kb = jax.random.split(key)
        bound = float(dim_in) ** -0.5
        # Stored as (dim_in, dim_out) = PyTorch weight.T
        self.weight = jax.random.uniform(
            kw, (dim_in, dim_out), jnp.float32, -bound, bound
        )
        self.bias = (
            jax.random.uniform(kb, (dim_out,), jnp.float32, -bound, bound)
            if bias else None
        )
        self.approximate = approximate
        self._weight_cache = {}        # per-dtype weight cast, done once

    def _weight_for(self, dtype):
        dtype = jnp.dtype(dtype)
        if dtype == self.weight.dtype or dtype.itemsize != 2:
            return self.weight
        if dtype.name not in self._weight_cache:
            self._weight_cache[dtype.name] = self.weight.astype(dtype)
        return self._weight_cache[dtype.name]

    def __call__(self, hidden_states):
        return gelu_linear(
            hidden_states,
            self._weight_for(hidden_states.dtype),
            self.bias,
            approximate=self.approximate,
        )


# ---------------------------------------------------------------------------
# Reference + self-test
# ---------------------------------------------------------------------------
def _ref_gelu_linear(x, w, b, approximate):
    z = x.reshape(-1, x.shape[-1]).astype(jnp.float32) @ w.astype(jnp.float32)
    z = z + b.astype(jnp.float32)
    if approximate == "tanh":
        c = 0.7978845608028654
        y = 0.5 * z * (1.0 + jnp.tanh(c * (z + 0.044715 * z ** 3)))
    else:
        y = 0.5 * z * (1.0 + lax.erf(z * 0.7071067811865476))
    return y.reshape(*x.shape[:-1], w.shape[1])


if __name__ == "__main__":
    key = jax.random.PRNGKey(0)
    kx, kp, kx2, kp2, kx3 = jax.random.split(key, 5)

    # --- small demo shapes (exact GELU, f32, accumulate-into-output path) ---
    batch, seq, dim_in, dim_out = 2, 8, 32, 64
    x = jax.random.normal(kx, (batch, seq, dim_in), jnp.float32)
    mod = GELUPallas(dim_in, dim_out, approximate="none", bias=True, key=kp)
    y = jax.block_until_ready(mod(x))
    ref = _ref_gelu_linear(x, mod.weight, mod.bias, "none")
    assert y.shape == (batch, seq, dim_out)
    assert jnp.allclose(y, ref, atol=1e-5, rtol=1e-5)

    # --- tanh approximation path ---
    mod_t = GELUPallas(dim_in, dim_out, approximate="tanh", bias=True, key=kp)
    y_t = jax.block_until_ready(mod_t(x))
    ref_t = _ref_gelu_linear(x, mod_t.weight, mod_t.bias, "tanh")
    assert jnp.allclose(y_t, ref_t, atol=1e-5, rtol=1e-5)

    # --- ragged M/N with unaligned K (no activation pad, masked edge tiles) ---
    x2 = jax.random.normal(kx2, (2, 100, 160), jnp.float32)
    mod2 = GELUPallas(160, 320, approximate="none", bias=True, key=kp2)
    y2 = jax.block_until_ready(mod2(x2))
    ref2 = _ref_gelu_linear(x2, mod2.weight, mod2.bias, "none")
    assert y2.shape == (2, 100, 320)
    assert jnp.allclose(y2, ref2, atol=1e-4, rtol=1e-4)

    # --- explicit small tiles: partial edge blocks in M and N + K padding ---
    y4 = jax.block_until_ready(
        gelu_linear(x2, mod2.weight, mod2.bias, approximate="none",
                    tm=64, tn=128, tk=128))
    assert jnp.allclose(y4, ref2, atol=1e-4, rtol=1e-4)

    # --- M smaller than a sublane tile (partial-M output masking) ---
    x5 = jax.random.normal(kx3, (2, 7, dim_in), jnp.float32)
    y5 = jax.block_until_ready(mod(x5))
    ref5 = _ref_gelu_linear(x5, mod.weight, mod.bias, "none")
    assert y5.shape == (2, 7, dim_out)
    assert jnp.allclose(y5, ref5, atol=1e-5, rtol=1e-5)

    # --- bf16 activations: bf16 MXU operands + f32 scratch accumulator ---
    xb = x.astype(jnp.bfloat16)
    yb = jax.block_until_ready(mod(xb))
    assert yb.dtype == jnp.bfloat16
    assert jnp.allclose(yb.astype(jnp.float32), ref, atol=5e-2, rtol=5e-2)

    print("KERNEL_OK")
</pallas_src>

<mosaic_0001>
module attributes {stable_mosaic.version = 11 : i64} {
  func.func @_gelu_proj_kernel(%arg0: i32, %arg1: i32, %arg2: i32, %arg3: memref<8x32xf32, #tpu.memory_space<vmem>>, %arg4: memref<32x64xf32, #tpu.memory_space<vmem>>, %arg5: memref<1x64xf32, #tpu.memory_space<vmem>>, %arg6: memref<8x64xf32, #tpu.memory_space<vmem>>) attributes {dimension_semantics = [#tpu.dimension_semantics<parallel>, #tpu.dimension_semantics<parallel>, #tpu.dimension_semantics<arbitrary>], iteration_bounds = array<i64: 2, 1, 1>, scalar_prefetch = 0 : i64, scratch_operands = 0 : i64, tpu.core_type = #tpu.core_type<tc>, window_params = [{transform_indices = @transform_0, window_bounds = array<i64: 8, 32>}, {transform_indices = @transform_1, window_bounds = array<i64: 32, 64>}, {transform_indices = @transform_2, window_bounds = array<i64: 1, 64>}, {transform_indices = @transform_3, window_bounds = array<i64: 8, 64>}]} {
    %c0_i32 = arith.constant 0 : i32
    %0 = arith.cmpi eq, %arg2, %c0_i32 : i32
    %1 = arith.extui %0 : i1 to i32
    %c0_i32_0 = arith.constant 0 : i32
    %2 = arith.cmpi ne, %1, %c0_i32_0 : i32
    scf.if %2 {
      %cst_10 = arith.constant 0.000000e+00 : f32
      %12 = vector.broadcast %cst_10 : f32 to vector<8x64xf32>
      %c0_11 = arith.constant 0 : index
      %c0_12 = arith.constant 0 : index
      %13 = vector.load %arg6[%c0_11, %c0_12] : memref<8x64xf32, #tpu.memory_space<vmem>>, vector<8x64xf32>
      tpu.vector_store %arg6[%c0_11, %c0_12], %12 {strides = array<i32>} : memref<8x64xf32, #tpu.memory_space<vmem>>, vector<8x64xf32>,
    } else {
    }
    %c0 = arith.constant 0 : index
    %c0_1 = arith.constant 0 : index
    %3 = vector.load %arg6[%c0, %c0_1] : memref<8x64xf32, #tpu.memory_space<vmem>>, vector<8x64xf32>
    %c0_2 = arith.constant 0 : index
    %c0_3 = arith.constant 0 : index
    %4 = vector.load %arg3[%c0_2, %c0_3] : memref<8x32xf32, #tpu.memory_space<vmem>>, vector<8x32xf32>
    %c0_4 = arith.constant 0 : index
    %c0_5 = arith.constant 0 : index
    %5 = vector.load %arg4[%c0_4, %c0_5] : memref<32x64xf32, #tpu.memory_space<vmem>>, vector<32x64xf32>
    %cst = arith.constant dense<0.000000e+00> : vector<8x64xf32>
    %6 = tpu.matmul %4, %5, %cst {dimension_numbers = #tpu.dot_dimension_numbers<[1], [0], [0], [1], [0, 0, 1, 1], [], []>} : vector<8x32xf32>, vector<32x64xf32>, vector<8x64xf32> -> vector<8x64xf32>
    %7 = arith.addf %3, %6 : vector<8x64xf32>
    %c0_6 = arith.constant 0 : index
    %c0_7 = arith.constant 0 : index
    %8 = vector.load %arg6[%c0_6, %c0_7] : memref<8x64xf32, #tpu.memory_space<vmem>>, vector<8x64xf32>
    tpu.vector_store %arg6[%c0_6, %c0_7], %7 {strides = array<i32>} : memref<8x64xf32, #tpu.memory_space<vmem>>, vector<8x64xf32>,
    %c0_i32_8 = arith.constant 0 : i32
    %9 = arith.cmpi eq, %arg2, %c0_i32_8 : i32
    %10 = arith.extui %9 : i1 to i32
    %c0_i32_9 = arith.constant 0 : i32
    %11 = arith.cmpi ne, %10, %c0_i32_9 : i32
    scf.if %11 {
      %c0_10 = arith.constant 0 : index
      %c0_11 = arith.constant 0 : index
      %12 = vector.load %arg6[%c0_10, %c0_11] : memref<8x64xf32, #tpu.memory_space<vmem>>, vector<8x64xf32>
      %c0_12 = arith.constant 0 : index
      %c0_13 = arith.constant 0 : index
      %13 = vector.load %arg5[%c0_12, %c0_13] : memref<1x64xf32, #tpu.memory_space<vmem>>, vector<1x64xf32>
      %14 = vector.broadcast %13 : vector<1x64xf32> to vector<8x64xf32>
      %15 = arith.addf %12, %14 : vector<8x64xf32>
      %cst_14 = arith.constant 5.000000e-01 : f32
      %16 = vector.broadcast %cst_14 : f32 to vector<8x64xf32>
      %17 = arith.mulf %16, %15 : vector<8x64xf32>
      %cst_15 = arith.constant 0.707106769 : f32
      %18 = vector.broadcast %cst_15 : f32 to vector<8x64xf32>
      %19 = arith.mulf %15, %18 : vector<8x64xf32>
      %20 = math.erf %19 : vector<8x64xf32>
      %cst_16 = arith.constant 1.000000e+00 : f32
      %21 = vector.broadcast %cst_16 : f32 to vector<8x64xf32>
      %22 = arith.addf %21, %20 : vector<8x64xf32>
      %23 = arith.mulf %17, %22 : vector<8x64xf32>
      %c0_17 = arith.constant 0 : index
      %c0_18 = arith.constant 0 : index
      %24 = vector.load %arg6[%c0_17, %c0_18] : memref<8x64xf32, #tpu.memory_space<vmem>>, vector<8x64xf32>
      tpu.vector_store %arg6[%c0_17, %c0_18], %23 {strides = array<i32>} : memref<8x64xf32, #tpu.memory_space<vmem>>, vector<8x64xf32>,
    } else {
    }
    return
  }
  func.func @transform_0(%arg0: i32, %arg1: i32, %arg2: i32) -> (i32, i32) {
    %c0_i32 = arith.constant 0 : i32
    return %arg0, %arg2 : i32, i32
  }
  func.func @transform_1(%arg0: i32, %arg1: i32, %arg2: i32) -> (i32, i32) {
    %c0_i32 = arith.constant 0 : i32
    return %arg2, %arg1 : i32, i32
  }
  func.func @transform_2(%arg0: i32, %arg1: i32, %arg2: i32) -> (i32, i32) {
    %c0_i32 = arith.constant 0 : i32
    %c0_i32_0 = arith.constant 0 : i32
    return %c0_i32, %arg1 : i32, i32
  }
  func.func @transform_3(%arg0: i32, %arg1: i32, %arg2: i32) -> (i32, i32) {
    %c0_i32 = arith.constant 0 : i32
    return %arg0, %arg1 : i32, i32
  }
}

</mosaic_0001>

<bundles_post_ra>
// kernel: tpu_custom_call.1
= control target key start
LH: loop header
LB: loop body
LE: loop exit
PB: predicated region body
PF: predicated region fallthrough
CT: control target
= control target key end

     0   :  { %8 = vsyncpa [#allocation3], 0  ;;  %s1004_s0 = inlined_call_operand.hbm [shape: f32[16,32], index: 0, kind: input, shape index: {}]   ;;  %s1005_s1 = inlined_call_operand.hbm [shape: f32[32,64], index: 1, kind: input, shape index: {}]   ;;  %s1006_s2 = inlined_call_operand.vmem [shape: f32[1,64], index: 2, kind: input, shape index: {}]   ;;  %s1007_s3 = inlined_call_operand.hbm [shape: f32[16,64], index: 3, kind: output, shape index: {}]  }
   0x1   :  { %10 = vsyncpa [#allocation3 + $0x1], 0 }
   0x2   :  { %11 = vsyncpa [#allocation6], 0 }
   0x3   :  { %12 = vsyncpa [#allocation4], 0 }
   0x4   :  { %14 = vsyncpa [#allocation4 + $0x1], 0  ;;  %s776_s12 = smov 0   ;;  %s778_s13 = smov 0  }
   0x5   :  { %s780_s14 = smov 0   ;;  %s782_s15 = smov 0  }
   0x6   :  { %s784_s16 = smov 0   ;;  %s786_s17 = smov 0  }
   0x7 LB: > { %s482_s18 = sadd.s32 4294967295, %s746_s17   ;;  %s483_s19 = sadd.s32 4294967294, %s746_s17   ;;  %s746_s17 = sphi %s786_s17, %s20_s17   ;;  %s742_s16 = sphi %s784_s16, %s1031_s16   ;;  %s738_s15 = sphi %s782_s15, %s1030_s15   ;;  %s734_s14 = sphi %s780_s14, %s1029_s14   ;;  %s730_s13 = sphi %s778_s13, %s1028_s13   ;;  %s726_s12 = sphi %s776_s12, %s1027_s12  }
   0x8   : > { %p61_p0 = scmp.ne.s32.totalorder %s730_s13, %s726_s12  ;;  %p810_p1 = scmp.eq.s32.totalorder %s482_s18, 0 }
   0x9   : > { %p814_p2 = scmp.eq.s32.totalorder %s482_s18, 1  ;;  %p147_p3 = scmp.eq.s32.totalorder %s483_s19, 1 }
   0xa   : > { %s1012_s20 = scalar_select %p810_p1, 1, 0 }
   0xb   : > { %s1013_s21 = scalar_select %p814_p2, 1, 0 }
   0xc   : > { %p820_p4 = por %p810_p1, %p61_p0  ;;  %p484_p5 = scmp.ge.s32.totalorder %s746_s17, 1 }
   0xd   : > { %p825_p6 = por %p147_p3, %p61_p0  ;;  %p154_p7 = scmp.lt.s32.totalorder %s746_s17, 3 }
   0xe   : > { %s1014_s22 = scalar_select %p820_p4, 1, 0 }
   0xf   : > { %s1015_s23 = scalar_select %p825_p6, 1, 0 }
  0x10   : > { %p830_p8 = pnand %p484_p5, %p154_p7  ;;  %s748_s25 = smov [#allocation5]  }
  0x11   : > { %s170_s26 = sshll.u32 %s748_s25, 4  ;;  %s39_s28 = sadd.s32 1, %s742_s16  ;;  %s171_s26 = int_to_ptr.vmem [resolvable:$true] %s170_s26 }
  0x12   : > { %s1016_s24 = scalar_select %p830_p8, 1, 0 }
  0x13   : > { %p530_p9 = pneg %p830_p8  ;;  %s602_s4 = scalar_lea.hbm %s1005_s1, 512 }
  0x14   : > { %p603_p12 = scmp.ne.s32.totalorder %s1005_s1, %s602_s4  ;;  %p609_p5 = scmp.lt.u32.totalorder %s602_s4, %s1005_s1 }
  0x15   : > { %p839_p11 = pnand %p530_p9, %p810_p1 }
  0x17   : > { %p604_p13 = pneg %p839_p11 }
  0x19   : > { %p605_p0 = pnand %p604_p13, %p603_p12 }
  0x1b   : > { %p606_p3 = pneg %p605_p0 }
  0x1d   : > { %p611_p7 = pnand %p609_p5, %p606_p3 }
  0x1f   : > { %614 = shalt.err (!%p611_p7)
}
  0x20   : > { %s615_s9 = scalar_lea.vmem %s171_s26, 512  ;;  %p623_p1 = scmp.lt.s32.totalorder %s171_s26, %s171_s26 }
  0x21   : > { %p616_p9 = scmp.ne.s32.totalorder %s171_s26, %s615_s9  ;;  %p624_p4 = scmp.lt.s32.totalorder %s615_s9, %s615_s9 }
  0x23   : > { %p618_p10 = pnand %p616_p9, %p604_p13  ;;  %p625_p8 = por %p624_p4, %p623_p1 }
  0x25   : > { %p619_p6 = pneg %p618_p10 }
  0x27   : > { %p626_p2 = pnand %p625_p8, %p619_p6 }
  0x29   : > { %629 = shalt.err (!%p626_p2)
}
  0x2a   : > { %s749_s10 = smov 128   ;;  %s750_s11 = smov 8  }
  0x2b   : > { %533 = dma.hbm_to_vmem [thread:$0]  (!%p839_p11), %s1005_s1, 512, %s171_s26, [#allocation6], %s749_s10, %s749_s10, %s750_s11  }
  0x2c   : > { %p41_p1 = scmp.ge.s32.totalorder %s39_s28, 2  ;;  %s48_s25 = sadd.s32 1, %s734_s14 }
  0x2d   : > { %p55_p2 = scmp.ne.s32.totalorder %s734_s14, %s730_s13  ;;  %p56_p4 = scmp.eq.s32.totalorder %s746_s17, 0 }
  0x2e   : > { %s1033_s28 = smov (%p41_p1, %s39_s28), 0  ;;  %p1019_p8 = scmp.ne.s32.totalorder %s1013_s21, 0 }
  0x2f   : > { %p866_p6 = por %p56_p4, %p55_p2  ;;  %s43_s27 = ssub.s32 %s742_s16, %s1033_s28 }
  0x30   : > { %p872_p10 = por %p1019_p8, %p55_p2  ;;  %p543_p12 = scmp.lt.s32.totalorder %s746_s17, 2 }
  0x31   : > { %p46_p11 = scmp.eq.s32.totalorder %s43_s27, 0  ;;  %s190_s26 = sand.u32 1, %s734_s14  }
  0x32   : > { %s488_s4 = sshll.u32 %s190_s26, 3  ;;  %s489_s6 = sshll.u32 %s742_s16, 7 }
  0x33   : > { %s881_s5 = scalar_select %p46_p11, %s734_s14, %s48_s25  }
  0x34   : > { %s887_s9 = scalar_lea.hbm %s1004_s0, %s489_s6  ;;  %s194_s21 = scalar_lea.vmem [#allocation2], %s488_s4 }
  0x35   : > { %s202_s10 = sshll.u32 %s194_s21, 4  ;;  %p893_p13 = pnand %p543_p12, %p866_p6  ;;  %s889_s10 = int_to_ptr.vmem [resolvable:$true] %s202_s10 }
  0x36   : > { %s191_s18 = scalar_lea.sflag [#allocation3], %s190_s26  ;;  %s630_s19 = scalar_lea.hbm %s887_s9, 128 }
  0x37   : > { %p631_p0 = scmp.ne.s32.totalorder %s887_s9, %s630_s19  ;;  %p632_p3 = pneg %p893_p13 }
  0x38   : > { %s635_s4 = scalar_lea.hbm %s1004_s0, 256  ;;  %p636_p9 = scmp.lt.u32.totalorder %s887_s9, %s1004_s0 }
  0x39   : > { %p633_p5 = pnand %p632_p3, %p631_p0  ;;  %p637_p1 = scmp.lt.u32.totalorder %s635_s4, %s630_s19 }
  0x3a   : > { %p639_p4 = scmp.lt.u32.totalorder %s630_s19, %s887_s9 }
  0x3b   : > { %p634_p7 = pneg %p633_p5  ;;  %p638_p2 = por %p637_p1, %p636_p9 }
  0x3d   : > { %p640_p6 = por %p639_p4, %p638_p2 }
  0x3f   : > { %p641_p8 = pnand %p640_p6, %p634_p7 }
  0x41   : > { %644 = shalt.err (!%p641_p8)
}
  0x42   : > { %s645_s26 = scalar_lea.vmem %s889_s10, 128  ;;  %s751_s7 = smov [#allocation2]  }
  0x43   : > { %p646_p12 = scmp.ne.s32.totalorder %s889_s10, %s645_s26  ;;  %s650_s8 = sshll.u32 %s751_s7, 4  ;;  %s651_s8 = int_to_ptr.vmem [resolvable:$false] %s650_s8 }
  0x44   : > { %s652_s21 = scalar_lea.vmem %s651_s8, 256  ;;  %p653_p5 = scmp.lt.s32.totalorder %s889_s10, %s651_s8 }
  0x45   : > { %p648_p11 = pnand %p646_p12, %p632_p3  ;;  %p654_p9 = scmp.lt.s32.totalorder %s652_s21, %s645_s26 }
  0x47   : > { %p649_p0 = pneg %p648_p11  ;;  %p655_p1 = por %p654_p9, %p653_p5 }
  0x49   : > { %p656_p2 = pnand %p655_p1, %p649_p0 }
  0x4b   : > { %659 = shalt.err (!%p656_p2)
}
  0x4c   : > { %537 = dma.hbm_to_vmem [thread:$0]  (!%p893_p13), %s887_s9, 128, %s889_s10, %s191_s18  }
  0x4d   : > { %p1022_p7 = scmp.ne.s32.totalorder %s1016_s24, 0 }
  0x4e   : > { %s925_s19 = sand.u32 (!%p1022_p7), 1, %s730_s13   ;;  %p1023_p3 = scmp.ne.s32.totalorder (!%p1022_p7), %s1014_s22, 0 }
  0x4f   : > { %211 = sbr.rel (%p1022_p7) target bundleno = 356 (0x164), region = 32  ;;  %s491_s25 = sshll.u32 (!%p1022_p7), %s925_s19, 3 }
  0x50   : > { %s214_s27 = scalar_lea.sflag (!%p1022_p7), [#allocation3], %s925_s19  ;;  %s217_s4 = scalar_lea.vmem (!%p1022_p7), [#allocation2], %s491_s25 }
  0x56   : > { %713 = dma.done.wait (%p1023_p3), %s214_s27, 128  }
  0x57   : > { %715 = vsyncadd (%p1023_p3), %s214_s27, 4294967168  ;;  %p1024_p4 = scmp.ne.s32.totalorder %s1012_s20, 0 }
  0x59   : > { %717 = dma.done.wait (%p1024_p4), [#allocation6], 512  }
  0x5a   : > { %719 = vsyncadd (%p1024_p4), [#allocation6], 4294966784  ;;  %vm255_vm0 = vcmask 523264   ;;  %v752_v0 = vmov 0.0|0.0   ;;  %s937_s24 = scalar_lea.vmem [#allocation7], %s491_s25  ;;  %v753_v1 = vmov 0.0  }
  0x5b   : > { %516 = vmatprep.subr.bf16.mxu0 %v752_v0  ;;  %256 = vst.msk [vmem:[%s937_s24] sm:$0xff] %vm255_vm0, %v753_v1  ;;  %vm754_vm1 = vmmov 0   ;;  %v259_v2 = vld [vmem:[#allocation5] sm:$0xff]  ;;  %v260_v3 = vld [vmem:[#allocation5 + $0x8] sm:$0xff]  ;;  %v261_v4 = vld [vmem:[#allocation5 + $0x10] sm:$0xff]  ;;  %vm263_vm2 = vcmask 261120  }
  0x5c   : > { %513 = vmatprep.mubr.msk.f32.mxu0 %vm754_vm1, %v753_v1  ;;  %v517_v5 = vpack.c.bf16 %v260_v3, %v259_v2  ;;  %v262_v6 = vld [vmem:[#allocation5 + $0x18] sm:$0xff]  ;;  %v495_v13 = vld [vmem:[%s1006_s2] ss:$0 sm:$0xff]  ;;  %s497_s9 = sshll.u32 %s738_s15, 7  ;;  %s373_s10 = sshll.u32 %s937_s24, 4  ;;  %s955_s10 = int_to_ptr.vmem [resolvable:$true] %s373_s10 }
  0x5d   : > { %v520_v7 = vpack.c.bf16 %v262_v6, %v261_v4  ;;  %v258_v8 = vld [vmem:[%s217_s4] sm:$0xff]  ;;  %s953_s29 = scalar_lea.hbm %s1007_s3, %s497_s9  ;;  %s359_s6 = scalar_lea.sflag [#allocation4], %s925_s19 }
  0x5e   : > { %518 = vmatpush3.bf16.msra.mxu0 %v517_v5  ;;  %s660_s26 = scalar_lea.vmem %s955_s10, 128  ;;  %s755_s15 = smov [#allocation7]  }
  0x5f   : > { %519 = vmatprep.subr.bf16.mxu0 %v752_v0  ;;  %p661_p13 = scmp.ne.s32.totalorder %s955_s10, %s660_s26  ;;  %s664_s7 = sshll.u32 %s755_s15, 4  ;;  %s665_s7 = int_to_ptr.vmem [resolvable:$false] %s664_s7 }
  0x60   : > { %s666_s8 = scalar_lea.vmem %s665_s7, 256  ;;  %p667_p12 = scmp.lt.s32.totalorder %s955_s10, %s665_s7 }
  0x61   : > { %p662_p6 = pnand %p661_p13, %p872_p10  ;;  %p668_p11 = scmp.lt.s32.totalorder %s666_s8, %s660_s26 }
  0x62   : > { %521 = vmatpush3.bf16.msra.mxu0 %v520_v7  ;;  %v257_v9 = vld [vmem:[%s937_s24] sm:$0xff] }
  0x63   : > { %p663_p8 = pneg %p662_p6  ;;  %p669_p0 = por %p668_p11, %p667_p12 }
  0x65   : > { %514 = vmatmul.mubr.msk.f32.vlgmr.msra.gmra.mrb[0].mxu0 %vm263_vm2, %v258_v8  ;;  %p670_p5 = pnand %p669_p0, %p663_p8 }
 0x138   : > { %v333_v10 = vpop.f32.mrb[0].mxu0 }
 0x139   : > { %v337_v11 = vadd.f32 %v333_v10, %v257_v9  ;;  %v515_v12 = vpop.f32.mrb[1].mxu0 }
 0x13b   : > { %339 = vst.msk [vmem:[%s937_s24] sm:$0xff] %vm255_vm0, %v337_v11 }
 0x142   : > { %v343_v14 = vld [vmem:[%s937_s24] sm:$0xff] }
 0x143   : > { %v351_v15 = vadd.f32 %v495_v13, %v343_v14 }
 0x145   : > { %v353_v16 = vmul.f32 0.70710677, %v351_v15  ;;  %v352_v18 = vmul.f32 0.5, %v351_v15 }
 0x147   : > { %600 = verf.f32 %v353_v16 }
 0x151   : > { %v601_v17 = vpop.eup %600 }
 0x152   : > { %v355_v19 = vadd.f32 1.0, %v601_v17 }
 0x154   : > { %v356_v20 = vmul.f32 %v355_v19, %v352_v18 }
 0x156   : > { %357 = vst.msk [vmem:[%s937_s24] sm:$0xff] %vm255_vm0, %v356_v20 }
 0x157   : > { %673 = shalt.err (!%p670_p5)
}
 0x158   : > { %s674_s21 = scalar_lea.hbm %s953_s29, 128  ;;  %s678_s27 = scalar_lea.hbm %s1007_s3, 256 }
 0x159   : > { %p675_p9 = scmp.ne.s32.totalorder %s953_s29, %s674_s21  ;;  %p679_p7 = scmp.lt.u32.totalorder %s953_s29, %s1007_s3 }
 0x15a   : > { %p680_p3 = scmp.lt.u32.totalorder %s678_s27, %s674_s21  ;;  %p682_p13 = scmp.lt.u32.totalorder %s674_s21, %s953_s29 }
 0x15b   : > { %p676_p1 = pnand %p675_p9, %p872_p10 }
 0x15c   : > { %p681_p4 = por %p680_p3, %p679_p7 }
 0x15d   : > { %p677_p2 = pneg %p676_p1 }
 0x15e   : > { %p683_p6 = por %p682_p13, %p681_p4 }
 0x160   : > { %p684_p8 = pnand %p683_p6, %p677_p2 }
 0x162   : > { %687 = shalt.err (!%p684_p8)
}
 0x163   : > { %528 = dma.vmem_to_hbm [thread:$0]  (%p872_p10), %s955_s10, 128, %s953_s29, %s359_s6  }
 0x164 PF: > { %s385_s20 = sand.u32 1, %s726_s12   ;;  %p1025_p12 = scmp.ne.s32.totalorder %s1015_s23, 0 }
 0x165   : > { %p1026_p11 = scmp.ge.s32.totalorder %s746_s17, 2  ;;  %s386_s22 = scalar_lea.sflag [#allocation4], %s385_s20 }
 0x167   : > { %p539_p0 = pnand %p1026_p11, %p1025_p12 }
 0x169   : > { %721 = dma.done.wait (!%p539_p0), %s386_s22, 128  }
 0x16a   : > { %723 = vsyncadd (!%p539_p0), %s386_s22, 4294967168  ;;  %s20_s17 = sadd.s32 1, %s746_s17   ;;  %s1027_s12 = smov %s730_s13 }
 0x16b   : > { %p17_p5 = scmp.ge.s32.totalorder %s20_s17, 4   ;;  %s1028_s13 = smov %s734_s14 }
 0x16c   : > { %s1029_s14 = smov %s881_s5  ;;  %s1030_s15 = smov %s742_s16 }
 0x16d   : > { %s1031_s16 = smov %s1033_s28  ;;  %19 = sbr.rel (!%p17_p5) target bundleno = 7 (0x7), region = 93 }
 0x174   :  { %391 = vsyncpa [#allocation3], 1 }
 0x175   :  { %393 = vsyncpa [#allocation3 + $0x1], 1 }
 0x176   :  { %394 = vsyncpa [#allocation6], 1 }
 0x177   :  { %395 = vsyncpa [#allocation4], 1 }
 0x178   :  { %397 = vsyncpa [#allocation4 + $0x1], 1 }

</bundles_post_ra>
